<compile_context>
chip_gen: v6e
topology: v6e:2x2x1
jax: 0.10.0
libtpu: 0.0.40
codegen_flags: <defaults>
</compile_context>

<pallas_src>
import jax
import jax.numpy as jnp
from jax import lax
from jax.experimental import pallas as pl
from jax.experimental.pallas import tpu as pltpu


def _round_up(x, m):
    return ((x + m - 1) // m) * m


def _vpu_is_bf16_native():
    """True on v6e/v7x (bf16 VPU datapath); False on v5e and older."""
    try:
        kind = jax.devices()[0].device_kind.lower()
    except Exception:
        return True
    for old in ("v2", "v3", "v4", "v5"):
        if old in kind:
            return False
    return True


def _make_mlp_kernel(num_layers, n_chunks, sub_n, compute_dtype, ew_dtypes):
    """Fused MLP kernel.

    Kernel refs, in order:
      x_ref  : [tile_n, in_ch]   native row-major activations (f32 from HBM)
      w_ref  : [d_out, d_in]     native PyTorch nn.Linear weight layout
      b_ref  : [d_out, 1]
      ... (repeated per layer) ...
      o_ref  : [out_ch, tile_n]  f32, lane-dense
    """

    def kernel(*refs):
        x_ref = refs[0]
        o_ref = refs[-1]
        # Weights / biases are grid-invariant: load once per grid step and
        # reuse across all lane sub-chunks.
        ws = [refs[1 + 2 * l][...] for l in range(num_layers)]
        bs = [refs[2 + 2 * l][...] for l in range(num_layers)]

        # Big DMA tile, small compute sub-tile: keeps the live [hidden, sub_n]
        # intermediate in vregs while the grid tile stays large.
        for c in range(n_chunks):
            sl = pl.ds(c * sub_n, sub_n)
            h = x_ref[sl, :]                          # [sub_n, in_ch], f32
            for l in range(num_layers):
                # Layer 0 contracts x's feature dim (dim 1) directly, which
                # also performs the [lanes, d] -> [d, lanes] reorientation.
                rhs_contract = 1 if l == 0 else 0
                h = lax.dot_general(
                    ws[l],
                    h.astype(compute_dtype),
                    (((1,), (rhs_contract,)), ((), ())),
                    preferred_element_type=ew_dtypes[l],
                ) + bs[l]                              # [d_out, sub_n]
                if l < num_layers - 1:
                    # ReLU; dropout == identity (inference semantics).
                    h = jnp.maximum(h, 0.0)
            # Final layer result is f32; sigmoid on EUP, lane-dense store.
            o_ref[:, sl] = jax.nn.sigmoid(h.astype(jnp.float32))

    return kernel


def mlp_score_forward(x, weights, biases, *, tile_n=2048, sub_n=512,
                      use_bf16=True, bf16_elementwise=None):
    """Fused MLP-score forward.

    x:        [N, in_channels] float32 (native layout, consumed as-is)
    weights:  list of [d_out, d_in] float32 (native PyTorch Linear layout)
    biases:   list of [d_out] float32
    returns:  sigmoid(last linear).squeeze(-1): [N] when out_channels == 1,
              else [N, out_channels].
    """
    num_layers = len(weights)
    N, in_ch = x.shape
    out_ch = weights[-1].shape[0]

    compute_dtype = jnp.bfloat16 if use_bf16 else jnp.float32
    if bf16_elementwise is None:
        bf16_elementwise = use_bf16 and _vpu_is_bf16_native()
    ew_hidden = jnp.bfloat16 if (use_bf16 and bf16_elementwise) else jnp.float32
    # Last layer (+ sigmoid + store) always in f32.
    ew_dtypes = [ew_hidden] * (num_layers - 1) + [jnp.float32]

    # --- lane-tile selection ---------------------------------------------
    tile_n = max(128, _round_up(int(tile_n), 128))
    # Keep >= 2 grid steps when N allows it so the "parallel" grid axis can be
    # sharded across the two TensorCores on v7x.
    cap_two_steps = _round_up(max(1, -(-N // 2)), 128)
    tile_n = min(tile_n, cap_two_steps)
    sub_n = max(128, _round_up(int(sub_n), 128))
    if tile_n > sub_n:
        tile_n = (tile_n // sub_n) * sub_n            # tile_n multiple of sub_n
    else:
        sub_n = tile_n
    n_chunks = tile_n // sub_n
    grid = (pl.cdiv(N, tile_n),)

    w_list = [w.astype(compute_dtype) for w in weights]
    b_list = [b.reshape(-1, 1).astype(dt) for b, dt in zip(biases, ew_dtypes)]

    kernel = _make_mlp_kernel(num_layers, n_chunks, sub_n, compute_dtype,
                              ew_dtypes)

    # x in native [N, in_ch] layout: block spans all in_ch columns (contiguous
    # HBM rows), no wrapper transpose / cast / pad pre-pass.
    in_specs = [pl.BlockSpec((tile_n, in_ch), lambda i: (i, 0))]
    for w, b in zip(w_list, b_list):
        dout, din = w.shape
        # Grid-invariant operands: constant index_map -> fetched once.
        in_specs.append(pl.BlockSpec((dout, din), lambda i: (0, 0)))
        in_specs.append(pl.BlockSpec((dout, 1), lambda i: (0, 0)))

    out_spec = pl.BlockSpec((out_ch, tile_n), lambda i: (0, i))

    out = pl.pallas_call(
        kernel,
        out_shape=jax.ShapeDtypeStruct((out_ch, N), jnp.float32),
        grid_spec=pl.GridSpec(
            grid=grid,
            in_specs=in_specs,
            out_specs=out_spec,
        ),
        compiler_params=pltpu.CompilerParams(
            dimension_semantics=("parallel",),
        ),
    )(x, *[a for wb in zip(w_list, b_list) for a in wb])

    if out_ch == 1:
        return out[0]
    return out.T


def init_mlp_params(key, in_channels, hidden_channels, out_channels, num_layers):
    """Deterministic init mimicking torch.nn.Linear default (uniform +-1/sqrt(fan_in)),
    in the native PyTorch layout: weight [d_out, d_in], bias [d_out]."""
    dims = (
        [(out_channels, in_channels)]
        if num_layers == 1
        else [(hidden_channels, in_channels)]
        + [(hidden_channels, hidden_channels)] * (num_layers - 2)
        + [(out_channels, hidden_channels)]
    )
    weights, biases = [], []
    for (dout, din) in dims:
        key, kw, kb = jax.random.split(key, 3)
        bound = 1.0 / (din ** 0.5)
        weights.append(
            jax.random.uniform(kw, (dout, din), jnp.float32, -bound, bound)
        )
        biases.append(
            jax.random.uniform(kb, (dout,), jnp.float32, -bound, bound)
        )
    return weights, biases


def _reference_forward(x, weights, biases):
    h = x
    for l, (w, b) in enumerate(zip(weights, biases)):
        h = h @ w.T + b
        if l < len(weights) - 1:
            h = jnp.maximum(h, 0.0)
    return jnp.squeeze(jax.nn.sigmoid(h), axis=-1)


if __name__ == "__main__":
    # N=1000 edge scores (non-multiple of the tile -> exercises partial blocks
    # and a 2-step grid), in_channels=16, hidden=32, out=1, 3 layers.
    N, in_channels, hidden_channels, out_channels, num_layers = 1000, 16, 32, 1, 3

    key = jax.random.PRNGKey(0)
    key, kx = jax.random.split(key)
    x = jax.random.normal(kx, (N, in_channels), jnp.float32)

    weights, biases = init_mlp_params(
        key, in_channels, hidden_channels, out_channels, num_layers
    )

    ref = _reference_forward(x, weights, biases)

    # f32 path: tight numerical check against the reference.
    out_f32 = jax.block_until_ready(
        mlp_score_forward(x, weights, biases, use_bf16=False)
    )
    assert out_f32.shape == (N,), out_f32.shape
    assert jnp.allclose(out_f32, ref, atol=1e-4, rtol=1e-4)

    # Default path: bf16 MXU inputs; bf16 hidden elementwise on v6e/v7x,
    # f32 elementwise on v5e and older; f32 final layer + sigmoid.
    out_def = jax.block_until_ready(mlp_score_forward(x, weights, biases))
    assert out_def.shape == (N,), out_def.shape
    assert jnp.allclose(out_def, ref, atol=3e-2, rtol=3e-2)

    print("KERNEL_OK")
</pallas_src>

<mosaic_0001>
module attributes {stable_mosaic.version = 11 : i64} {
  func.func @kernel(%arg0: i32, %arg1: memref<512x16xf32, #tpu.memory_space<vmem>>, %arg2: memref<32x16xf32, #tpu.memory_space<vmem>>, %arg3: memref<32x1xf32, #tpu.memory_space<vmem>>, %arg4: memref<32x32xf32, #tpu.memory_space<vmem>>, %arg5: memref<32x1xf32, #tpu.memory_space<vmem>>, %arg6: memref<1x32xf32, #tpu.memory_space<vmem>>, %arg7: memref<1x1xf32, #tpu.memory_space<vmem>>, %arg8: memref<1x512xf32, #tpu.memory_space<vmem>>) attributes {dimension_semantics = [#tpu.dimension_semantics<parallel>], iteration_bounds = array<i64: 2>, scalar_prefetch = 0 : i64, scratch_operands = 0 : i64, tpu.core_type = #tpu.core_type<tc>, window_params = [{transform_indices = @transform_0, window_bounds = array<i64: 512, 16>}, {pipeline_mode = #tpu.pipeline_mode<synchronous>, transform_indices = @transform_1, window_bounds = array<i64: 32, 16>}, {pipeline_mode = #tpu.pipeline_mode<synchronous>, transform_indices = @transform_2, window_bounds = array<i64: 32, 1>}, {pipeline_mode = #tpu.pipeline_mode<synchronous>, transform_indices = @transform_3, window_bounds = array<i64: 32, 32>}, {pipeline_mode = #tpu.pipeline_mode<synchronous>, transform_indices = @transform_4, window_bounds = array<i64: 32, 1>}, {pipeline_mode = #tpu.pipeline_mode<synchronous>, transform_indices = @transform_5, window_bounds = array<i64: 1, 32>}, {pipeline_mode = #tpu.pipeline_mode<synchronous>, transform_indices = @transform_6, window_bounds = array<i64: 1, 1>}, {transform_indices = @transform_7, window_bounds = array<i64: 1, 512>}]} {
    %c0 = arith.constant 0 : index
    %c0_0 = arith.constant 0 : index
    %0 = vector.load %arg2[%c0, %c0_0] : memref<32x16xf32, #tpu.memory_space<vmem>>, vector<32x16xf32>
    %c0_1 = arith.constant 0 : index
    %c0_2 = arith.constant 0 : index
    %1 = vector.load %arg4[%c0_1, %c0_2] : memref<32x32xf32, #tpu.memory_space<vmem>>, vector<32x32xf32>
    %c0_3 = arith.constant 0 : index
    %c0_4 = arith.constant 0 : index
    %2 = vector.load %arg6[%c0_3, %c0_4] : memref<1x32xf32, #tpu.memory_space<vmem>>, vector<1x32xf32>
    %c0_5 = arith.constant 0 : index
    %c0_6 = arith.constant 0 : index
    %3 = vector.load %arg3[%c0_5, %c0_6] : memref<32x1xf32, #tpu.memory_space<vmem>>, vector<32x1xf32>
    %c0_7 = arith.constant 0 : index
    %c0_8 = arith.constant 0 : index
    %4 = vector.load %arg5[%c0_7, %c0_8] : memref<32x1xf32, #tpu.memory_space<vmem>>, vector<32x1xf32>
    %c0_9 = arith.constant 0 : index
    %c0_10 = arith.constant 0 : index
    %5 = vector.load %arg7[%c0_9, %c0_10] : memref<1x1xf32, #tpu.memory_space<vmem>>, vector<1x1xf32>
    %c0_11 = arith.constant 0 : index
    %c0_12 = arith.constant 0 : index
    %6 = vector.load %arg1[%c0_11, %c0_12] : memref<512x16xf32, #tpu.memory_space<vmem>>, vector<512x16xf32>
    %cst = arith.constant dense<0.000000e+00> : vector<32x512xf32>
    %7 = tpu.matmul %0, %6, %cst {dimension_numbers = #tpu.dot_dimension_numbers<[1], [1], [0], [0], [0, 0, 1, 0], [], []>} : vector<32x16xf32>, vector<512x16xf32>, vector<32x512xf32> -> vector<32x512xf32>
    %8 = vector.broadcast %3 : vector<32x1xf32> to vector<32x512xf32>
    %9 = arith.addf %7, %8 : vector<32x512xf32>
    %cst_13 = arith.constant 0.000000e+00 : f32
    %10 = vector.broadcast %cst_13 : f32 to vector<32x512xf32>
    %11 = arith.maximumf %9, %10 : vector<32x512xf32>
    %cst_14 = arith.constant dense<0.000000e+00> : vector<32x512xf32>
    %12 = tpu.matmul %1, %11, %cst_14 {dimension_numbers = #tpu.dot_dimension_numbers<[1], [0], [0], [1], [0, 0, 1, 1], [], []>} : vector<32x32xf32>, vector<32x512xf32>, vector<32x512xf32> -> vector<32x512xf32>
    %13 = vector.broadcast %4 : vector<32x1xf32> to vector<32x512xf32>
    %14 = arith.addf %12, %13 : vector<32x512xf32>
    %cst_15 = arith.constant 0.000000e+00 : f32
    %15 = vector.broadcast %cst_15 : f32 to vector<32x512xf32>
    %16 = arith.maximumf %14, %15 : vector<32x512xf32>
    %cst_16 = arith.constant dense<0.000000e+00> : vector<1x512xf32>
    %17 = tpu.matmul %2, %16, %cst_16 {dimension_numbers = #tpu.dot_dimension_numbers<[1], [0], [0], [1], [0, 0, 1, 1], [], []>} : vector<1x32xf32>, vector<32x512xf32>, vector<1x512xf32> -> vector<1x512xf32>
    %18 = vector.broadcast %5 : vector<1x1xf32> to vector<1x512xf32>
    %19 = arith.addf %17, %18 : vector<1x512xf32>
    %20 = arith.negf %19 : vector<1x512xf32>
    %21 = math.exp %20 : vector<1x512xf32>
    %cst_17 = arith.constant 1.000000e+00 : f32
    %22 = vector.broadcast %cst_17 : f32 to vector<1x512xf32>
    %23 = arith.addf %22, %21 : vector<1x512xf32>
    %24 = arith.divf %22, %23 : vector<1x512xf32>
    %c0_18 = arith.constant 0 : index
    %c0_19 = arith.constant 0 : index
    %25 = vector.load %arg8[%c0_18, %c0_19] : memref<1x512xf32, #tpu.memory_space<vmem>>, vector<1x512xf32>
    tpu.vector_store %arg8[%c0_18, %c0_19], %24 {strides = array<i32>} : memref<1x512xf32, #tpu.memory_space<vmem>>, vector<1x512xf32>,
    return
  }
  func.func @transform_0(%arg0: i32) -> (i32, i32) {
    %c0_i32 = arith.constant 0 : i32
    %c0_i32_0 = arith.constant 0 : i32
    return %arg0, %c0_i32 : i32, i32
  }
  func.func @transform_1(%arg0: i32) -> (i32, i32) {
    %c0_i32 = arith.constant 0 : i32
    %c0_i32_0 = arith.constant 0 : i32
    %c0_i32_1 = arith.constant 0 : i32
    return %c0_i32, %c0_i32_0 : i32, i32
  }
  func.func @transform_2(%arg0: i32) -> (i32, i32) {
    %c0_i32 = arith.constant 0 : i32
    %c0_i32_0 = arith.constant 0 : i32
    %c0_i32_1 = arith.constant 0 : i32
    return %c0_i32, %c0_i32_0 : i32, i32
  }
  func.func @transform_3(%arg0: i32) -> (i32, i32) {
    %c0_i32 = arith.constant 0 : i32
    %c0_i32_0 = arith.constant 0 : i32
    %c0_i32_1 = arith.constant 0 : i32
    return %c0_i32, %c0_i32_0 : i32, i32
  }
  func.func @transform_4(%arg0: i32) -> (i32, i32) {
    %c0_i32 = arith.constant 0 : i32
    %c0_i32_0 = arith.constant 0 : i32
    %c0_i32_1 = arith.constant 0 : i32
    return %c0_i32, %c0_i32_0 : i32, i32
  }
  func.func @transform_5(%arg0: i32) -> (i32, i32) {
    %c0_i32 = arith.constant 0 : i32
    %c0_i32_0 = arith.constant 0 : i32
    %c0_i32_1 = arith.constant 0 : i32
    return %c0_i32, %c0_i32_0 : i32, i32
  }
  func.func @transform_6(%arg0: i32) -> (i32, i32) {
    %c0_i32 = arith.constant 0 : i32
    %c0_i32_0 = arith.constant 0 : i32
    %c0_i32_1 = arith.constant 0 : i32
    return %c0_i32, %c0_i32_0 : i32, i32
  }
  func.func @transform_7(%arg0: i32) -> (i32, i32) {
    %c0_i32 = arith.constant 0 : i32
    %c0_i32_0 = arith.constant 0 : i32
    return %c0_i32, %arg0 : i32, i32
  }
}

</mosaic_0001>

<bundles_post_ra>
// kernel: tpu_custom_call.1
= control target key start
LH: loop header
LB: loop body
LE: loop exit
PB: predicated region body
PF: predicated region fallthrough
CT: control target
= control target key end

     0   :  { %s1973_s0 = inlined_call_operand.vmem [shape: f32[1000,16], index: 0, kind: input, shape index: {}]   ;;  %s1974_s1 = inlined_call_operand.vmem [shape: f32[32,16], index: 1, kind: input, shape index: {}]   ;;  %s1975_s2 = inlined_call_operand.vmem [shape: f32[32,1], index: 2, kind: input, shape index: {}]   ;;  %s1976_s3 = inlined_call_operand.vmem [shape: f32[32,32], index: 3, kind: input, shape index: {}]   ;;  %s1977_s4 = inlined_call_operand.vmem [shape: f32[32,1], index: 4, kind: input, shape index: {}]   ;;  %s1978_s5 = inlined_call_operand.vmem [shape: f32[1,32], index: 5, kind: input, shape index: {}]   ;;  %s1979_s6 = inlined_call_operand.<no memory space> [shape: f32[1,1], index: 6, kind: input, shape index: {}]   ;;  %s1980_s7 = inlined_call_operand.hbm [shape: f32[1,1000], index: 7, kind: output, shape index: {}]  }
   0x1   :  { %v12_v0 = vstv %s1979_s6 }
   0x2   :  { %13 = vst [vmem:[#allocation2] sm:$0x1] %v12_v0 }
   0x3   :  { %14 = vsyncpa [#allocation4], 0 }
   0x4   :  { %16 = vsyncpa [#allocation4 + $0x1], 0  ;;  %s1664_s26 = smov 0   ;;  %s1666_s27 = smov 0  }
   0x5   :  { %s1668_s28 = smov 0   ;;  %s1670_s29 = smov 0  }
   0x6 LB: > { %s1315_s6 = sadd.s32 4294967295, %s1615_s29   ;;  %s1316_s30 = sadd.s32 4294967294, %s1615_s29   ;;  %s1615_s29 = sphi %s1670_s29, %s1986_s29   ;;  %s1611_s28 = sphi %s1668_s28, %s1985_s28   ;;  %s1607_s27 = sphi %s1666_s27, %s1984_s27   ;;  %s1603_s26 = sphi %s1664_s26, %s1983_s26  }
   0x7   : > { %s1687_s8 = sadd.s32 1, %s1615_s29   ;;  %s181_s9 = sadd.s32 1, %s1611_s28 }
   0x8   : > { %s178_s10 = ssub.s32 %s1615_s29, %s1687_s8  ;;  %p191_p0 = scmp.ne.s32.totalorder %s1611_s28, %s1607_s27 }
   0x9   : > { %p179_p1 = scmp.eq.s32.totalorder %s178_s10, 0  ;;  %p192_p2 = scmp.eq.s32.totalorder %s1315_s6, 1 }
   0xa   : > { %p197_p3 = scmp.ne.s32.totalorder %s1607_s27, %s1603_s26  ;;  %p198_p4 = scmp.eq.s32.totalorder %s1316_s30, 1 }
   0xb   : > { %s1697_s11 = scalar_select %p179_p1, %s1611_s28, %s181_s9  }
   0xc   : > { %p1699_p5 = por %p192_p2, %p191_p0  ;;  %p1703_p6 = por %p198_p4, %p197_p3 }
   0xd   : > { %p1319_p7 = scmp.ge.s32.totalorder %s1615_s29, 1  ;;  %p251_p8 = scmp.lt.s32.totalorder %s1615_s29, 3 }
   0xf   : > { %p252_p9 = pnand %p1319_p7, %p251_p8 }
  0x10   : > { %s1709_s14 = sshll.u32 (!%p252_p9), %s1315_s6, 6  ;;  %s284_s24 = sand.u32 (!%p252_p9), 1, %s1607_s27  }
  0x11   : > { %255 = sbr.rel (%p252_p9) target bundleno = 782 (0x30e), region = 48  ;;  %p292_p10 = scmp.lt.s32.totalorder (!%p252_p9), %s1709_s14, 124 }
  0x12   : > { %s1320_s25 = sshll.u32 (!%p252_p9), %s284_s24, 2  ;;  %s1255_s15 = scalar_lea.hbm (!%p252_p9), %s1980_s7, %s1709_s14 }
  0x13   : > { %s1243_s16 = scalar_lea.sflag (!%p252_p9), [#allocation4], %s284_s24  ;;  %s1620_s18 = smov (!%p252_p9), [#allocation3]  }
  0x14   : > { %s1559_s19 = sshll.u32 (!%p252_p9), %s1620_s18, 4  ;;  %s1560_s19 = int_to_ptr.vmem [resolvable:$false] %s1559_s19 }
  0x15   : > { %s1561_s20 = scalar_lea.vmem (!%p252_p9), %s1560_s19, 128 }
  0x16   : > { %vm404_vm0 = vcmask 130048   ;;  %v1714_v1 = vld [vmem:[%s1974_s1] sm:$0xff]  ;;  %v314_v2 = vld [vmem:[%s1975_s2 + $0x18] sm:$0xff]  ;;  %v312_v3 = vld [vmem:[%s1975_s2 + $0x8] sm:$0xff]  ;;  %v1617_v4 = vmov 0   ;;  %s293_s21 = scalar_select %p292_p10, %s1709_s14, 124 }
  0x17   : > { %1447 = vmatprep.mubr.msk.f32.mxu0 %vm404_vm0, %v1714_v1  ;;  %1487 = vmatprep.mubr.msk.f32.mxu1 %vm404_vm0, %v1714_v1  ;;  %v313_v5 = vld [vmem:[%s1975_s2 + $0x10] sm:$0xff]  ;;  %v311_v6 = vld [vmem:[%s1975_s2] sm:$0xff]  ;;  %v318_v7 = vld [vmem:[%s1977_s4 + $0x18] sm:$0xff]  ;;  %vm823_vm1 = vcmask 261120  }
  0x18   : > { %1538 = vset.pattern.permute.xlu1 %v1617_v4  ;;  %1537 = vset.pattern.permute.xlu0 %v1617_v4  ;;  %s1322_s6 = sshll.u32 %s293_s21, 3  ;;  %v317_v8 = vld [vmem:[%s1977_s4 + $0x10] sm:$0xff]  ;;  %v316_v19 = vld [vmem:[%s1977_s4 + $0x8] sm:$0xff]  ;;  %v315_v20 = vld [vmem:[%s1977_s4] sm:$0xff] }
  0x19   : > { %401 = vperm.xlu0 %1537, %v314_v2   ;;  %391 = vperm.xlu1 %1538, %v312_v3   ;;  %s1737_s10 = scalar_lea.vmem %s1973_s0, %s1322_s6  ;;  %v319_v25 = vld [vmem:[#allocation2] sm:$0x1]  ;;  %s286_s6 = scalar_lea.vmem [#allocation3], %s1320_s25 }
  0x1a   : > { %v351_v9 = vld [vmem:[%s1737_s10 + $0xf8] sm:$0xff]  ;;  %v350_v13 = vld [vmem:[%s1737_s10 + $0xf0] sm:$0xff]  ;;  %v349_v17 = vld [vmem:[%s1737_s10 + $0xe8] sm:$0xff]  ;;  %s1257_s30 = sshll.u32 %s286_s6, 4  ;;  %s1258_s30 = int_to_ptr.vmem [resolvable:$true] %s1257_s30 }
  0x1b   : > { %v383_v10 = vld [vmem:[%s1737_s10 + $0x1f8] sm:$0xff]  ;;  %1415 = vmatprep.subr.msk.mxu0 %vm404_vm0, %v351_v9  ;;  %v382_v14 = vld [vmem:[%s1737_s10 + $0x1f0] sm:$0xff]  ;;  %v381_v18 = vld [vmem:[%s1737_s10 + $0x1e8] sm:$0xff]  ;;  %s1555_s17 = scalar_lea.vmem %s1258_s30, 64  ;;  %p1562_p0 = scmp.lt.s32.totalorder %s1258_s30, %s1560_s19 }
  0x1c   : > { %v335_v11 = vld [vmem:[%s1737_s10 + $0x78] sm:$0xff]  ;;  %1455 = vmatprep.subr.msk.mxu1 %vm404_vm0, %v383_v10  ;;  %v334_v15 = vld [vmem:[%s1737_s10 + $0x70] sm:$0xff]  ;;  %v333_v21 = vld [vmem:[%s1737_s10 + $0x68] sm:$0xff]  ;;  %p1556_p11 = scmp.ne.s32.totalorder %s1258_s30, %s1555_s17  ;;  %p1563_p1 = scmp.lt.s32.totalorder %s1561_s20, %s1555_s17 }
  0x1d   : > { %396 = vperm.xlu0 %1537, %v313_v5   ;;  %386 = vperm.xlu1 %1538, %v311_v6   ;;  %v367_v12 = vld [vmem:[%s1737_s10 + $0x178] sm:$0xff]  ;;  %v366_v16 = vld [vmem:[%s1737_s10 + $0x170] sm:$0xff]  ;;  %v365_v22 = vld [vmem:[%s1737_s10 + $0x168] sm:$0xff] }
  0x1e   : > { %1416 = vmatpush3.xpose.msk.msra.mxu0 %vm404_vm0, %v335_v11  ;;  %1456 = vmatpush3.xpose.msk.msra.mxu1 %vm404_vm0, %v367_v12  ;;  %v348_v23 = vld [vmem:[%s1737_s10 + $0xe0] sm:$0xff]  ;;  %v347_v28 = vld [vmem:[%s1737_s10 + $0xd8] sm:$0xff]  ;;  %v346_v32 = vld [vmem:[%s1737_s10 + $0xd0] sm:$0xff]  ;;  %p1557_p12 = pnand %p1556_p11, %p1699_p5  ;;  %p1564_p2 = por %p1563_p1, %p1562_p0 }
  0x1f   : > { %1417 = vmatprep.subr.msk.mxu0 %vm404_vm0, %v350_v13  ;;  %1457 = vmatprep.subr.msk.mxu1 %vm404_vm0, %v382_v14  ;;  %v380_v24 = vld [vmem:[%s1737_s10 + $0x1e0] sm:$0xff]  ;;  %v379_v29 = vld [vmem:[%s1737_s10 + $0x1d8] sm:$0xff]  ;;  %v378_v33 = vld [vmem:[%s1737_s10 + $0x1d0] sm:$0xff] }
  0x20   : > { %v332_v26 = vld [vmem:[%s1737_s10 + $0x60] sm:$0xff]  ;;  %v331_v30 = vld [vmem:[%s1737_s10 + $0x58] sm:$0xff]  ;;  %v330_v34 = vld [vmem:[%s1737_s10 + $0x50] sm:$0xff]  ;;  %p1558_p13 = pneg %p1557_p12 }
  0x21   : > { %820 = vperm.xlu0 %1537, %v318_v7   ;;  %815 = vperm.xlu1 %1538, %v317_v8   ;;  %v364_v27 = vld [vmem:[%s1737_s10 + $0x160] sm:$0xff]  ;;  %v363_v31 = vld [vmem:[%s1737_s10 + $0x158] sm:$0xff]  ;;  %v362_v35 = vld [vmem:[%s1737_s10 + $0x150] sm:$0xff] }
  0x22   : > { %1418 = vmatpush3.xpose.msk.msra.mxu0 %vm404_vm0, %v334_v15  ;;  %1458 = vmatpush3.xpose.msk.msra.mxu1 %vm404_vm0, %v366_v16  ;;  %v345_v36 = vld [vmem:[%s1737_s10 + $0xc8] sm:$0xff]  ;;  %v344_v40 = vld [vmem:[%s1737_s10 + $0xc0] sm:$0xff]  ;;  %v343_v44 = vld [vmem:[%s1737_s10 + $0xb8] sm:$0xff]  ;;  %v1618_v15 = vmov 0.0   ;;  %p1565_p3 = pnand %p1564_p2, %p1558_p13 }
  0x23   : > { %1419 = vmatprep.subr.msk.mxu0 %vm404_vm0, %v349_v17  ;;  %1459 = vmatprep.subr.msk.mxu1 %vm404_vm0, %v381_v18  ;;  %v377_v37 = vld [vmem:[%s1737_s10 + $0x1c8] sm:$0xff]  ;;  %v376_v41 = vld [vmem:[%s1737_s10 + $0x1c0] sm:$0xff]  ;;  %v375_v45 = vld [vmem:[%s1737_s10 + $0x1b8] sm:$0xff] }
  0x24   : > { %v329_v38 = vld [vmem:[%s1737_s10 + $0x48] sm:$0xff]  ;;  %v328_v42 = vld [vmem:[%s1737_s10 + $0x40] sm:$0xff]  ;;  %v327_v46 = vld [vmem:[%s1737_s10 + $0x38] sm:$0xff] }
  0x25   : > { %810 = vperm.xlu0 %1537, %v316_v19   ;;  %805 = vperm.xlu1 %1538, %v315_v20   ;;  %v361_v39 = vld [vmem:[%s1737_s10 + $0x148] sm:$0xff]  ;;  %v360_v43 = vld [vmem:[%s1737_s10 + $0x140] sm:$0xff]  ;;  %v359_v47 = vld [vmem:[%s1737_s10 + $0x138] sm:$0xff] }
  0x26   : > { %1420 = vmatpush3.xpose.msk.msra.mxu0 %vm404_vm0, %v333_v21  ;;  %1460 = vmatpush3.xpose.msk.msra.mxu1 %vm404_vm0, %v365_v22  ;;  %v342_v48 = vld [vmem:[%s1737_s10 + $0xb0] sm:$0xff]  ;;  %v341_v52 = vld [vmem:[%s1737_s10 + $0xa8] sm:$0xff]  ;;  %v340_v56 = vld [vmem:[%s1737_s10 + $0xa0] sm:$0xff] }
  0x27   : > { %1421 = vmatprep.subr.msk.mxu0 %vm404_vm0, %v348_v23  ;;  %1461 = vmatprep.subr.msk.mxu1 %vm404_vm0, %v380_v24  ;;  %v374_v49 = vld [vmem:[%s1737_s10 + $0x1b0] sm:$0xff]  ;;  %v373_v53 = vld [vmem:[%s1737_s10 + $0x1a8] sm:$0xff]  ;;  %v372_v57 = vld [vmem:[%s1737_s10 + $0x1a0] sm:$0xff] }
  0x28   : > { %v326_v50 = vld [vmem:[%s1737_s10 + $0x30] sm:$0xff]  ;;  %v325_v54 = vld [vmem:[%s1737_s10 + $0x28] sm:$0xff]  ;;  %v324_v58 = vld [vmem:[%s1737_s10 + $0x20] sm:$0xff] }
  0x29   : > { %1032 = vperm.xlu0 %1537, %v319_v25   ;;  %v358_v51 = vld [vmem:[%s1737_s10 + $0x130] sm:$0xff]  ;;  %v357_v55 = vld [vmem:[%s1737_s10 + $0x128] sm:$0xff]  ;;  %v356_v59 = vld [vmem:[%s1737_s10 + $0x120] sm:$0xff] }
  0x2a   : > { %1422 = vmatpush3.xpose.msk.msra.mxu0 %vm404_vm0, %v332_v26  ;;  %1462 = vmatpush3.xpose.msk.msra.mxu1 %vm404_vm0, %v364_v27  ;;  %v339_v60 = vld [vmem:[%s1737_s10 + $0x98] sm:$0xff]  ;;  %v338_v0 = vld [vmem:[%s1737_s10 + $0x90] sm:$0xff]  ;;  %v337_v5 = vld [vmem:[%s1737_s10 + $0x88] sm:$0xff] }
  0x2b   : > { %1423 = vmatprep.subr.msk.mxu0 %vm404_vm0, %v347_v28  ;;  %1463 = vmatprep.subr.msk.mxu1 %vm404_vm0, %v379_v29  ;;  %v371_v61 = vld [vmem:[%s1737_s10 + $0x198] sm:$0xff]  ;;  %v370_v2 = vld [vmem:[%s1737_s10 + $0x190] sm:$0xff]  ;;  %v369_v6 = vld [vmem:[%s1737_s10 + $0x188] sm:$0xff] }
  0x2c   : > { %v323_v62 = vld [vmem:[%s1737_s10 + $0x18] sm:$0xff]  ;;  %v322_v3 = vld [vmem:[%s1737_s10 + $0x10] sm:$0xff]  ;;  %v321_v7 = vld [vmem:[%s1737_s10 + $0x8] sm:$0xff] }
  0x2d   : > { %v355_v63 = vld [vmem:[%s1737_s10 + $0x118] sm:$0xff]  ;;  %v354_v4 = vld [vmem:[%s1737_s10 + $0x110] sm:$0xff]  ;;  %v353_v8 = vld [vmem:[%s1737_s10 + $0x108] sm:$0xff] }
  0x2e   : > { %1424 = vmatpush3.xpose.msk.msra.mxu0 %vm404_vm0, %v331_v30  ;;  %1464 = vmatpush3.xpose.msk.msra.mxu1 %vm404_vm0, %v363_v31  ;;  %v336_v9 = vld [vmem:[%s1737_s10 + $0x80] sm:$0xff]  ;;  %v303_v13 = vld [vmem:[%s1974_s1 + $0x8] sm:$0xff]  ;;  %v304_v14 = vld [vmem:[%s1974_s1 + $0x10] sm:$0xff] }
  0x2f   : > { %1425 = vmatprep.subr.msk.mxu0 %vm404_vm0, %v346_v32  ;;  %1465 = vmatprep.subr.msk.mxu1 %vm404_vm0, %v378_v33  ;;  %v368_v10 = vld [vmem:[%s1737_s10 + $0x180] sm:$0xff] }
  0x30   : > { %v320_v11 = vld [vmem:[%s1737_s10] sm:$0xff] }
  0x31   : > { %v352_v12 = vld [vmem:[%s1737_s10 + $0x100] sm:$0xff] }
  0x32   : > { %1426 = vmatpush3.xpose.msk.msra.mxu0 %vm404_vm0, %v330_v34  ;;  %1466 = vmatpush3.xpose.msk.msra.mxu1 %vm404_vm0, %v362_v35 }
  0x33   : > { %1427 = vmatprep.subr.msk.mxu0 %vm404_vm0, %v345_v36  ;;  %1467 = vmatprep.subr.msk.mxu1 %vm404_vm0, %v377_v37 }
  0x36   : > { %1428 = vmatpush3.xpose.msk.msra.mxu0 %vm404_vm0, %v329_v38  ;;  %1468 = vmatpush3.xpose.msk.msra.mxu1 %vm404_vm0, %v361_v39 }
  0x37   : > { %1429 = vmatprep.subr.msk.mxu0 %vm404_vm0, %v344_v40  ;;  %1469 = vmatprep.subr.msk.mxu1 %vm404_vm0, %v376_v41 }
  0x3a   : > { %1430 = vmatpush3.xpose.msk.msra.mxu0 %vm404_vm0, %v328_v42  ;;  %1470 = vmatpush3.xpose.msk.msra.mxu1 %vm404_vm0, %v360_v43 }
  0x3b   : > { %1431 = vmatprep.subr.msk.mxu0 %vm404_vm0, %v343_v44  ;;  %1471 = vmatprep.subr.msk.mxu1 %vm404_vm0, %v375_v45 }
  0x3e   : > { %1432 = vmatpush3.xpose.msk.msra.mxu0 %vm404_vm0, %v327_v46  ;;  %1472 = vmatpush3.xpose.msk.msra.mxu1 %vm404_vm0, %v359_v47 }
  0x3f   : > { %1433 = vmatprep.subr.msk.mxu0 %vm404_vm0, %v342_v48  ;;  %1473 = vmatprep.subr.msk.mxu1 %vm404_vm0, %v374_v49 }
  0x42   : > { %1434 = vmatpush3.xpose.msk.msra.mxu0 %vm404_vm0, %v326_v50  ;;  %1474 = vmatpush3.xpose.msk.msra.mxu1 %vm404_vm0, %v358_v51 }
  0x43   : > { %1435 = vmatprep.subr.msk.mxu0 %vm404_vm0, %v341_v52  ;;  %1475 = vmatprep.subr.msk.mxu1 %vm404_vm0, %v373_v53 }
  0x46   : > { %1436 = vmatpush3.xpose.msk.msra.mxu0 %vm404_vm0, %v325_v54  ;;  %1476 = vmatpush3.xpose.msk.msra.mxu1 %vm404_vm0, %v357_v55 }
  0x47   : > { %1437 = vmatprep.subr.msk.mxu0 %vm404_vm0, %v340_v56  ;;  %1477 = vmatprep.subr.msk.mxu1 %vm404_vm0, %v372_v57 }
  0x4a   : > { %1438 = vmatpush3.xpose.msk.msra.mxu0 %vm404_vm0, %v324_v58  ;;  %1478 = vmatpush3.xpose.msk.msra.mxu1 %vm404_vm0, %v356_v59 }
  0x4b   : > { %1439 = vmatprep.subr.msk.mxu0 %vm404_vm0, %v339_v60  ;;  %1479 = vmatprep.subr.msk.mxu1 %vm404_vm0, %v371_v61 }
  0x4e   : > { %1440 = vmatpush3.xpose.msk.msra.mxu0 %vm404_vm0, %v323_v62  ;;  %1480 = vmatpush3.xpose.msk.msra.mxu1 %vm404_vm0, %v355_v63 }
  0x4f   : > { %1441 = vmatprep.subr.msk.mxu0 %vm404_vm0, %v338_v0  ;;  %1481 = vmatprep.subr.msk.mxu1 %vm404_vm0, %v370_v2 }
  0x52   : > { %1442 = vmatpush3.xpose.msk.msra.mxu0 %vm404_vm0, %v322_v3  ;;  %1482 = vmatpush3.xpose.msk.msra.mxu1 %vm404_vm0, %v354_v4 }
  0x53   : > { %1443 = vmatprep.subr.msk.mxu0 %vm404_vm0, %v337_v5  ;;  %1483 = vmatprep.subr.msk.mxu1 %vm404_vm0, %v369_v6  ;;  %v306_v5 = vld [vmem:[%s1976_s3] sm:$0xff]  ;;  %v307_v6 = vld [vmem:[%s1976_s3 + $0x8] sm:$0xff] }
  0x56   : > { %1444 = vmatpush3.xpose.msk.msra.mxu0 %vm404_vm0, %v321_v7  ;;  %1484 = vmatpush3.xpose.msk.msra.mxu1 %vm404_vm0, %v353_v8  ;;  %v308_v7 = vld [vmem:[%s1976_s3 + $0x10] sm:$0xff]  ;;  %v309_v8 = vld [vmem:[%s1976_s3 + $0x18] sm:$0xff] }
  0x57   : > { %1445 = vmatprep.subr.msk.mxu0 %vm404_vm0, %v336_v9  ;;  %1485 = vmatprep.subr.msk.mxu1 %vm404_vm0, %v368_v10 }
  0x5a   : > { %1446 = vmatpush3.xpose.msk.msra.mxu0 %vm404_vm0, %v320_v11  ;;  %1486 = vmatpush3.xpose.msk.msra.mxu1 %vm404_vm0, %v352_v12 }
  0x5d   : > { %1448 = vmatmul.mubr.msk.f32.vlgmr.msra.gmra.mxu0 %vm404_vm0, %v1714_v1  ;;  %1488 = vmatmul.mubr.msk.f32.vlgmr.msra.gmra.mxu1 %vm404_vm0, %v1714_v1  ;;  %v305_v1 = vld [vmem:[%s1974_s1 + $0x18] sm:$0xff] }
  0x5e   : > { %1449 = vmatprep.mubr.msk.f32.mxu0 %vm404_vm0, %v303_v13  ;;  %1489 = vmatprep.mubr.msk.f32.mxu1 %vm404_vm0, %v303_v13 }
  0x61   : > { %1450 = vmatmul.mubr.msk.f32.gmra.mxu0 %vm404_vm0, %v303_v13  ;;  %1490 = vmatmul.mubr.msk.f32.gmra.mxu1 %vm404_vm0, %v303_v13 }
  0x62   : > { %1451 = vmatprep.mubr.msk.f32.mxu0 %vm404_vm0, %v304_v14  ;;  %1491 = vmatprep.mubr.msk.f32.mxu1 %vm404_vm0, %v304_v14 }
  0x65   : > { %1452 = vmatmul.mubr.msk.f32.gmra.mxu0 %vm404_vm0, %v304_v14  ;;  %1492 = vmatmul.mubr.msk.f32.gmra.mxu1 %vm404_vm0, %v304_v14 }
  0x66   : > { %1453 = vmatprep.mubr.msk.f32.mxu0 %vm404_vm0, %v305_v1  ;;  %1493 = vmatprep.mubr.msk.f32.mxu1 %vm404_vm0, %v305_v1 }
  0x69   : > { %1454 = vmatmul.mubr.msk.f32.gmra.mxu0 %vm404_vm0, %v305_v1  ;;  %1494 = vmatmul.mubr.msk.f32.gmra.mxu1 %vm404_vm0, %v305_v1 }
  0x6a   : > { %900 = vmatprep.mubr.f32.mxu0 %v1618_v15  ;;  %989 = vmatprep.mubr.f32.mxu1 %v1618_v15 }
  0x94   : > { %v402_v24 = vpop.permute.xlu0 %401  ;;  %v392_v29 = vpop.permute.xlu1 %391 }
  0x98   : > { %v397_v32 = vpop.permute.xlu0 %396  ;;  %v387_v43 = vpop.permute.xlu1 %386 }
 0x11d   : > { %v675_v16 = vpop.f32.mrf.mxu0  ;;  %v764_v17 = vpop.f32.mrf.mxu1 }
 0x11e   : > { %v676_v56 = vadd.f32 %v675_v16, %v387_v43  ;;  %v765_v57 = vadd.f32 %v764_v17, %v387_v43 }
 0x11f   : > { %v677_v18 = vpop.f32.mrf.mxu0  ;;  %v766_v19 = vpop.f32.mrf.mxu1 }
 0x120   : > { %v678_v52 = vadd.f32 %v677_v18, %v387_v43  ;;  %v767_v53 = vadd.f32 %v766_v19, %v387_v43  ;;  %v787_v3 = vmax.f32 %v676_v56, 0.0  ;;  %v789_v4 = vmax.f32 %v765_v57, 0.0  ;;  %v821_v19 = vpop.permute.xlu0 %820 }
 0x121   : > { %v681_v20 = vpop.f32.mrf.mxu0  ;;  %v770_v21 = vpop.f32.mrf.mxu1 }
 0x122   : > { %v682_v48 = vadd.f32 %v681_v20, %v392_v29  ;;  %v771_v49 = vadd.f32 %v770_v21, %v392_v29  ;;  %v788_v0 = vmax.f32 %v678_v52, 0.0  ;;  %v790_v2 = vmax.f32 %v767_v53, 0.0 }
 0x123   : > { %v683_v22 = vpop.f32.mrf.mxu0  ;;  %v772_v23 = vpop.f32.mrf.mxu1 }
 0x124   : > { %v684_v44 = vadd.f32 %v683_v22, %v392_v29  ;;  %v773_v45 = vadd.f32 %v772_v23, %v392_v29  ;;  %v791_v62 = vmax.f32 %v682_v48, 0.0  ;;  %v793_v63 = vmax.f32 %v771_v49, 0.0  ;;  %v816_v22 = vpop.permute.xlu1 %815 }
 0x125   : > { %v687_v25 = vpop.f32.mrf.mxu0  ;;  %v776_v26 = vpop.f32.mrf.mxu1 }
 0x126   : > { %v688_v41 = vadd.f32 %v687_v25, %v397_v32  ;;  %v777_v42 = vadd.f32 %v776_v26, %v397_v32  ;;  %v792_v60 = vmax.f32 %v684_v44, 0.0  ;;  %v794_v61 = vmax.f32 %v773_v45, 0.0 }
 0x127   : > { %v689_v27 = vpop.f32.mrf.mxu0  ;;  %v778_v28 = vpop.f32.mrf.mxu1 }
 0x128   : > { %v690_v37 = vadd.f32 %v689_v27, %v397_v32  ;;  %v779_v38 = vadd.f32 %v778_v28, %v397_v32  ;;  %v795_v58 = vmax.f32 %v688_v41, 0.0  ;;  %v797_v59 = vmax.f32 %v777_v42, 0.0  ;;  %v811_v32 = vpop.permute.xlu0 %810 }
 0x129   : > { %v693_v30 = vpop.f32.mrf.mxu0  ;;  %v782_v31 = vpop.f32.mrf.mxu1 }
 0x12a   : > { %v694_v33 = vadd.f32 %v693_v30, %v402_v24  ;;  %v783_v34 = vadd.f32 %v782_v31, %v402_v24  ;;  %v796_v54 = vmax.f32 %v690_v37, 0.0  ;;  %v798_v55 = vmax.f32 %v779_v38, 0.0 }
 0x12b   : > { %v695_v35 = vpop.f32.mrf.mxu0  ;;  %v784_v36 = vpop.f32.mrf.mxu1 }
 0x12c   : > { %v696_v39 = vadd.f32 %v695_v35, %v402_v24  ;;  %v785_v40 = vadd.f32 %v784_v36, %v402_v24  ;;  %v799_v50 = vmax.f32 %v694_v33, 0.0  ;;  %v801_v51 = vmax.f32 %v783_v34, 0.0 }
 0x12e   : > { %v800_v46 = vmax.f32 %v696_v39, 0.0  ;;  %v802_v47 = vmax.f32 %v785_v40, 0.0  ;;  %v806_v39 = vpop.permute.xlu1 %805 }
 0x130   : > { %860 = vmatprep.subr.mxu0 %v800_v46  ;;  %949 = vmatprep.subr.mxu1 %v802_v47 }
 0x131   : > { %861 = vmatpush1.msra.mxu0 %v799_v50  ;;  %950 = vmatpush1.msra.mxu1 %v801_v51 }
 0x132   : > { %862 = vmatprep.subr.mxu0 %v796_v54  ;;  %951 = vmatprep.subr.mxu1 %v798_v55 }
 0x133   : > { %863 = vmatpush1.msra.mxu0 %v795_v58  ;;  %952 = vmatpush1.msra.mxu1 %v797_v59 }
 0x134   : > { %864 = vmatprep.subr.mxu0 %v792_v60  ;;  %953 = vmatprep.subr.mxu1 %v794_v61  ;;  %v310_v60 = vld [vmem:[%s1978_s5] sm:$0x1]  ;;  %v1035_v61 = vlaneseq }
 0x135   : > { %865 = vmatpush1.msra.mxu0 %v791_v62  ;;  %954 = vmatpush1.msra.mxu1 %v793_v63 }
 0x136   : > { %866 = vmatprep.subr.mxu0 %v788_v0  ;;  %955 = vmatprep.subr.mxu1 %v790_v2  ;;  %v1036_v62 = vshrl.u32 %v1035_v61, 7  ;;  %v1033_v0 = vpop.permute.xlu0 %1032  ;;  %vm1239_vm2 = vcmp.lt.s32.totalorder %v1035_v61, 512 }
 0x137   : > { %867 = vmatpush1.msra.mxu0 %v787_v3  ;;  %956 = vmatpush1.msra.mxu1 %v789_v4 }
 0x138   : > { %1395 = vmatmul.mubr.msk.f32.vlgmr.msra.gmra.mxu0 %vm823_vm1, %v306_v5  ;;  %1399 = vmatmul.mubr.msk.f32.vlgmr.msra.gmra.mxu1 %vm823_vm1, %v306_v5  ;;  %v1037_v63 = vsub.s32 0, %v1036_v62 }
 0x139   : > { %906 = vmatprep.mubr.f32.mxu0 %v1618_v15  ;;  %995 = vmatprep.mubr.f32.mxu1 %v1618_v15 }
 0x13a   : > { %v1038_v2 = vrot.slane %v1033_v0, %v1037_v63 }
 0x13c   : > { %1396 = vmatmul.mubr.msk.f32.gmra.mxu0 %vm823_vm1, %v307_v6  ;;  %1400 = vmatmul.mubr.msk.f32.gmra.mxu1 %vm823_vm1, %v307_v6 }
 0x13d   : > { %912 = vmatprep.mubr.f32.mxu0 %v1618_v15  ;;  %1001 = vmatprep.mubr.f32.mxu1 %v1618_v15 }
 0x140   : > { %1397 = vmatmul.mubr.msk.f32.gmra.mxu0 %vm823_vm1, %v308_v7  ;;  %1401 = vmatmul.mubr.msk.f32.gmra.mxu1 %vm823_vm1, %v308_v7 }
 0x141   : > { %918 = vmatprep.mubr.f32.mxu0 %v1618_v15  ;;  %1007 = vmatprep.mubr.f32.mxu1 %v1618_v15 }
 0x144   : > { %1398 = vmatmul.mubr.msk.f32.gmra.mxu0 %vm823_vm1, %v309_v8  ;;  %1402 = vmatmul.mubr.msk.f32.gmra.mxu1 %vm823_vm1, %v309_v8 }
 0x145   : > { %1106 = vmatprep.mubr.f32.mxu0 %v1618_v15  ;;  %1177 = vmatprep.mubr.f32.mxu1 %v1618_v15 }
 0x1f8   : > { %v902_v9 = vpop.f32.mrf.mxu0  ;;  %v991_v10 = vpop.f32.mrf.mxu1 }
 0x1f9   : > { %v903_v48 = vadd.f32 %v902_v9, %v806_v39  ;;  %v992_v49 = vadd.f32 %v991_v10, %v806_v39 }
 0x1fa   : > { %v904_v11 = vpop.f32.mrf.mxu0  ;;  %v993_v12 = vpop.f32.mrf.mxu1 }
 0x1fb   : > { %v905_v44 = vadd.f32 %v904_v11, %v806_v39  ;;  %v994_v45 = vadd.f32 %v993_v12, %v806_v39  ;;  %v1014_v58 = vmax.f32 %v903_v48, 0.0  ;;  %v1016_v59 = vmax.f32 %v992_v49, 0.0 }
 0x1fc   : > { %v908_v13 = vpop.f32.mrf.mxu0  ;;  %v997_v14 = vpop.f32.mrf.mxu1 }
 0x1fd   : > { %v909_v40 = vadd.f32 %v908_v13, %v811_v32  ;;  %v998_v41 = vadd.f32 %v997_v14, %v811_v32  ;;  %v1015_v56 = vmax.f32 %v905_v44, 0.0  ;;  %v1017_v57 = vmax.f32 %v994_v45, 0.0 }
 0x1fe   : > { %v910_v1 = vpop.f32.mrf.mxu0  ;;  %v999_v16 = vpop.f32.mrf.mxu1 }
 0x1ff   : > { %v911_v35 = vadd.f32 %v910_v1, %v811_v32  ;;  %v1000_v36 = vadd.f32 %v999_v16, %v811_v32  ;;  %v1018_v54 = vmax.f32 %v909_v40, 0.0  ;;  %v1020_v55 = vmax.f32 %v998_v41, 0.0 }
 0x200   : > { %v914_v17 = vpop.f32.mrf.mxu0  ;;  %v1003_v18 = vpop.f32.mrf.mxu1 }
 0x201   : > { %v915_v33 = vadd.f32 %v914_v17, %v816_v22  ;;  %v1004_v34 = vadd.f32 %v1003_v18, %v816_v22  ;;  %v1019_v52 = vmax.f32 %v911_v35, 0.0  ;;  %v1021_v53 = vmax.f32 %v1000_v36, 0.0 }
 0x202   : > { %v916_v20 = vpop.f32.mrf.mxu0  ;;  %v1005_v21 = vpop.f32.mrf.mxu1 }
 0x203   : > { %v917_v28 = vadd.f32 %v916_v20, %v816_v22  ;;  %v1006_v29 = vadd.f32 %v1005_v21, %v816_v22  ;;  %v1022_v50 = vmax.f32 %v915_v33, 0.0  ;;  %v1024_v51 = vmax.f32 %v1004_v34, 0.0 }
 0x204   : > { %v920_v23 = vpop.f32.mrf.mxu0  ;;  %v1009_v24 = vpop.f32.mrf.mxu1 }
 0x205   : > { %v921_v25 = vadd.f32 %v920_v23, %v821_v19  ;;  %v1010_v26 = vadd.f32 %v1009_v24, %v821_v19  ;;  %v1023_v46 = vmax.f32 %v917_v28, 0.0  ;;  %v1025_v47 = vmax.f32 %v1006_v29, 0.0 }
 0x206   : > { %v922_v27 = vpop.f32.mrf.mxu0  ;;  %v1011_v15 = vpop.f32.mrf.mxu1  ;;  %v1619_v23 = vmov 1966171168  }
 0x207   : > { %v923_v30 = vadd.f32 %v922_v27, %v821_v19  ;;  %v1012_v31 = vadd.f32 %v1011_v15, %v821_v19  ;;  %v1026_v42 = vmax.f32 %v921_v25, 0.0  ;;  %v1028_v43 = vmax.f32 %v1010_v26, 0.0 }
 0x208   : > { %v1215_v24 = vunpack.c.l.s4 %v1619_v23 }
 0x209   : > { %v1027_v37 = vmax.f32 %v923_v30, 0.0  ;;  %v1029_v38 = vmax.f32 %v1012_v31, 0.0 }
 0x20a   : > { %v1216_v25 = vunpack.c.0.s8 %v1215_v24 }
 0x20b   : > { %1066 = vmatprep.subr.mxu0 %v1027_v37  ;;  %1137 = vmatprep.subr.mxu1 %v1029_v38 }
 0x20c   : > { %1067 = vmatpush1.msra.mxu0 %v1026_v42  ;;  %1138 = vmatpush1.msra.mxu1 %v1028_v43  ;;  %v1219_v15 = vsub.s32 %v1216_v25, %v1036_v62 }
 0x20d   : > { %1068 = vmatprep.subr.mxu0 %v1023_v46  ;;  %1139 = vmatprep.subr.mxu1 %v1025_v47 }
 0x20e   : > { %1069 = vmatpush1.msra.mxu0 %v1022_v50  ;;  %1140 = vmatpush1.msra.mxu1 %v1024_v51 }
 0x20f   : > { %1070 = vmatprep.subr.mxu0 %v1019_v52  ;;  %1141 = vmatprep.subr.mxu1 %v1021_v53 }
 0x210   : > { %1071 = vmatpush1.msra.mxu0 %v1018_v54  ;;  %1142 = vmatpush1.msra.mxu1 %v1020_v55 }
 0x211   : > { %1072 = vmatprep.subr.mxu0 %v1015_v56  ;;  %1143 = vmatprep.subr.mxu1 %v1017_v57 }
 0x212   : > { %1073 = vmatpush1.msra.mxu0 %v1014_v58  ;;  %1144 = vmatpush1.msra.mxu1 %v1016_v59 }
 0x213   : > { %1403 = vmatmul.mubr.msk.f32.vlgmr.msra.gmra.mxu0 %vm823_vm1, %v310_v60  ;;  %1404 = vmatmul.mubr.msk.f32.vlgmr.msra.gmra.mxu1 %vm823_vm1, %v310_v60 }
 0x2d3   : > { %v1108_v3 = vpop.f32.mrf.mxu0  ;;  %v1179_v4 = vpop.f32.mrf.mxu1 }
 0x2d4   : > { %v1109_v5 = vadd.f32 %v1108_v3, %v1038_v2  ;;  %v1180_v6 = vadd.f32 %v1179_v4, %v1038_v2 }
 0x2d5   : > { %v1110_v7 = vpop.f32.mrf.mxu0  ;;  %v1181_v8 = vpop.f32.mrf.mxu1 }
 0x2d6   : > { %v1405_v9 = vmul.f32 -1.442695, %v1109_v5  ;;  %v1407_v10 = vmul.f32 -1.442695, %v1180_v6  ;;  %v1111_v11 = vadd.f32 %v1110_v7, %v1038_v2  ;;  %v1182_v12 = vadd.f32 %v1181_v8, %v1038_v2 }
 0x2d8   : > { %1539 = vpow2.f32 %v1405_v9  ;;  %v1406_v13 = vmul.f32 -1.442695, %v1111_v11  ;;  %v1408_v14 = vmul.f32 -1.442695, %v1182_v12 }
 0x2d9   : > { %1541 = vpow2.f32 %v1407_v10 }
 0x2da   : > { %1543 = vpow2.f32 %v1406_v13 }
 0x2db   : > { %1545 = vpow2.f32 %v1408_v14 }
 0x2e5   : > { %v1540_v1 = vpop.eup %1539 }
 0x2e6   : > { %v1542_v16 = vpop.eup %1541  ;;  %v1196_v17 = vadd.f32 1.0, %v1540_v1 }
 0x2e7   : > { %v1544_v18 = vpop.eup %1543  ;;  %v1198_v19 = vadd.f32 1.0, %v1542_v16 }
 0x2e8   : > { %v1546_v20 = vpop.eup %1545  ;;  %1547 = vrcp.f32 %v1196_v17  ;;  %v1197_v21 = vadd.f32 1.0, %v1544_v18 }
 0x2e9   : > { %1549 = vrcp.f32 %v1198_v19  ;;  %v1199_v22 = vadd.f32 1.0, %v1546_v20 }
 0x2ea   : > { %1551 = vrcp.f32 %v1197_v21 }
 0x2eb   : > { %1553 = vrcp.f32 %v1199_v22 }
 0x2f5   : > { %v1548_v26 = vpop.eup %1547 }
 0x2f6   : > { %v1550_v27 = vpop.eup %1549 }
 0x2f7   : > { %v1552_v28 = vpop.eup %1551 }
 0x2f8   : > { %v1554_v29 = vpop.eup %1553  ;;  %v1212_v30 = vcombine.low %v1548_v26, %v1552_v28 }
 0x2f9   : > { %v1213_v31 = vcombine.low %v1550_v27, %v1554_v29 }
 0x2fa   : > { %v1220_v32 = vrot.slane %v1212_v30, %v1219_v15 }
 0x2fb   : > { %v1227_v33 = vrot.slane %v1213_v31, %v1219_v15 }
 0x2fd   : > { %v1228_v34 = vcombine.low %v1220_v32, %v1227_v33 }
 0x2ff   : > { %v1235_v35 = vrot.slane %v1228_v34, %v1219_v15 }
 0x301   : > { %1241 = vst.msk [vmem:[%s286_s6] sm:$0xf] %vm1239_vm2, %v1235_v35 }
 0x302   : > { %1568 = shalt.err (!%p1565_p3)
}
 0x303   : > { %s1569_s21 = scalar_lea.hbm %s1255_s15, 64  ;;  %s1573_s23 = scalar_lea.hbm %s1980_s7, 128 }
 0x304   : > { %p1570_p4 = scmp.ne.s32.totalorder %s1255_s15, %s1569_s21  ;;  %p1574_p9 = scmp.lt.s32.totalorder %s1255_s15, %s1980_s7 }
 0x305   : > { %p1575_p10 = scmp.lt.s32.totalorder %s1573_s23, %s1569_s21 }
 0x306   : > { %p1571_p7 = pnand %p1570_p4, %p1699_p5 }
 0x307   : > { %p1576_p11 = por %p1575_p10, %p1574_p9 }
 0x308   : > { %p1572_p8 = pneg %p1571_p7 }
 0x30a   : > { %p1577_p12 = pnand %p1576_p11, %p1572_p8 }
 0x30c   : > { %1580 = shalt.err (!%p1577_p12)
}
 0x30d   : > { %1495 = dma.vmem_to_hbm [thread:$0]  (%p1699_p5), %s1258_s30, 64, %s1255_s15, %s1243_s16  }
 0x30e PF: > { %p1501_p13 = scmp.ge.s32.totalorder %s1615_s29, 2  ;;  %s1269_s6 = sand.u32 1, %s1603_s26  }
 0x30f   : > { %s1270_s9 = scalar_lea.sflag [#allocation4], %s1269_s6 }
 0x310   : > { %p1498_p0 = pnand %p1501_p13, %p1703_p6 }
 0x312   : > { %p1499_p1 = pneg %p1498_p0 }
 0x314   : > { %1598 = dma.done.wait (%p1499_p1), %s1270_s9, 64  }
 0x315   : > { %1600 = vsyncadd (%p1499_p1), %s1270_s9, 4294967232  ;;  %p19_p2 = scmp.ge.s32.totalorder %s1687_s8, 4   ;;  %s1983_s26 = smov %s1607_s27 }
 0x316   : > { %s1984_s27 = smov %s1611_s28  ;;  %s1985_s28 = smov %s1697_s11 }
 0x317   : > { %s1986_s29 = smov %s1687_s8  ;;  %21 = sbr.rel (!%p19_p2) target bundleno = 6 (0x6), region = 83 }
 0x31c   :  { %1275 = vsyncpa [#allocation4], 1 }
 0x31d   :  { %1277 = vsyncpa [#allocation4 + $0x1], 1 }

</bundles_post_ra>
